<compile_context>
chip_gen: v6e
topology: v6e:2x2x1
jax: 0.10.0
libtpu: 0.0.40
codegen_flags: <defaults>
</compile_context>

<pallas_src>
import math
import jax
import jax.numpy as jnp
from jax.experimental import pallas as pl
from jax.experimental.pallas import tpu as pltpu  # noqa: F401  (imported per template)

# ---------------- config (small, consistent with the module) ----------------
B, S = 2, 8                     # batch, seq
HIDDEN = 32                     # config.hidden_size
NUM_HEADS = 4                   # config.num_attention_heads
HEAD_DIM = HIDDEN // NUM_HEADS  # 8
NUM_KV_HEADS = 2                # config.num_key_value_heads
N_REP = NUM_HEADS // NUM_KV_HEADS
INTERMEDIATE = 64               # config.intermediate_size
EPS = 1e-6                      # config.rms_norm_eps
ROPE_BASE = 10000.0             # LlamaRotaryEmbedding base

Q_W = NUM_HEADS * HEAD_DIM          # 32
KV_W = NUM_KV_HEADS * HEAD_DIM      # 16
QKV_W = Q_W + 2 * KV_W              # 64   fused q|k|v width
PROJ_W = 2 * QKV_W                  # 128  q|k|v|rot(q)|rot(k)|0  (lane-dense)
NEG_BIG = -1e30                     # cross-batch attention mask value

assert HEAD_DIM % 2 == 0


# -------------------- LlamaRotaryEmbedding (the spec module) -----------------
def llama_rotary_embedding(seq_len, dim, base=ROPE_BASE, dtype=jnp.float32):
    """== LlamaRotaryEmbedding.forward(x, seq_len): cos/sin cache sliced to seq_len.

    Returned with the leading (1, 1, ...) broadcast dims squeezed: (seq_len, dim).
    """
    # TODO(synk): the dynamic cache-growth branch (seq_len > max_seq_len_cached
    # re-registering buffers) is host-side buffer management; the cache is
    # simply (re)built for the requested seq_len here.
    inv_freq = 1.0 / (base ** (jnp.arange(0, dim, 2, dtype=jnp.float32) / dim))
    t = jnp.arange(seq_len, dtype=jnp.float32)
    freqs = jnp.outer(t, inv_freq)
    emb = jnp.concatenate([freqs, freqs], axis=-1)        # (seq_len, dim)
    return jnp.cos(emb).astype(dtype), jnp.sin(emb).astype(dtype)


def _rotate_half_matrix(d):
    """(d,d) signed permutation R with  x @ R == rotate_half(x)  (exact)."""
    half = d // 2
    r = jnp.zeros((d, d), jnp.float32)
    r = r.at[jnp.arange(half) + half, jnp.arange(half)].set(-1.0)
    r = r.at[jnp.arange(half), jnp.arange(half) + half].set(1.0)
    return r


def prepare_fused_inputs(p, batch, seq):
    """Host-side (once): fused weights, rotate_half folded into W, tiled cos/sin,
    block-diagonal batch mask.  All exact f32 transforms; matmul weights -> bf16."""
    H, D = HIDDEN, HEAD_DIM
    rot = _rotate_half_matrix(D)
    wq_rot = p["wq"] @ jnp.kron(jnp.eye(NUM_HEADS, dtype=jnp.float32), rot)
    wk_rot = p["wk"] @ jnp.kron(jnp.eye(NUM_KV_HEADS, dtype=jnp.float32), rot)
    # columns: [ q (32) | k (16) | v (16) | rot(q) (32) | rot(k) (16) | 0 (16) ]
    w_big = jnp.concatenate(
        [p["wq"], p["wk"], p["wv"], wq_rot, wk_rot,
         jnp.zeros((2 * H, KV_W), jnp.float32)], axis=1)          # (2H, 128)

    cos, sin = llama_rotary_embedding(seq, D)                      # (S, D) each
    n_chunks = NUM_HEADS + NUM_KV_HEADS                            # q heads + kv heads
    cs0 = jnp.concatenate([jnp.tile(cos, (1, n_chunks)),
                           jnp.ones((seq, KV_W), jnp.float32)], axis=1)   # (S, 64)
    cs1 = jnp.concatenate([jnp.tile(sin, (1, n_chunks)),
                           jnp.zeros((seq, KV_W), jnp.float32)], axis=1)  # (S, 64)
    cs = jnp.stack([jnp.tile(cs0, (batch, 1)),
                    jnp.tile(cs1, (batch, 1))])                    # (2, B*S, 64)

    rows = jnp.arange(batch * seq) // seq
    bias = jnp.where(rows[:, None] == rows[None, :], 0.0, NEG_BIG).astype(jnp.float32)

    return {
        "ln_in": p["input_ln_w"].reshape(1, H),
        "ln_hid": p["hidden_ln_w"].reshape(1, H),
        "ln_post": p["post_ln_w"].reshape(1, H),
        "w_ie": w_big[:H].astype(jnp.bfloat16),                    # rows for rms(input_embeds)
        "w_hs": w_big[H:].astype(jnp.bfloat16),                    # rows for rms(hidden_states)
        "wo_r": p["wo"].reshape(NUM_HEADS, D, H).astype(jnp.bfloat16),
        "wgu": jnp.concatenate([p["wg"], p["wu"]], axis=1).astype(jnp.bfloat16),  # (H, 2I)
        "wd": p["wd"].astype(jnp.bfloat16),
        "cs": cs,
        "bias": bias,
    }


# ------------------------- fused decoder-layer kernel ------------------------
def _decoder_layer_kernel(ie_ref, hs_ref,
                          ln_in_ref, ln_hid_ref, ln_post_ref,
                          w_ie_ref, w_hs_ref, wo_ref, wgu_ref, wd_ref,
                          cs_ref, bias_ref,
                          o_ref):
    ie = ie_ref[...].astype(jnp.float32)          # (R, H), R = B*S
    hs = hs_ref[...].astype(jnp.float32)          # (R, H)
    rows = ie.shape[0]

    def rms(x, w_ref):                            # f32 VPU math
        var = jnp.mean(x * x, axis=-1, keepdims=True)
        return w_ref[...].astype(jnp.float32) * (x * jax.lax.rsqrt(var + EPS))

    residual = hs
    x_ie = rms(ie, ln_in_ref).astype(jnp.bfloat16)
    x_hs = rms(hs, ln_hid_ref).astype(jnp.bfloat16)

    # fused projection [q|k|v|rot(q)|rot(k)|0]: two accumulating MXU pushes
    # (no in-kernel concat of the two RMSNorm outputs), bf16 in / f32 accum.
    qkv = (jnp.dot(x_ie, w_ie_ref[...], preferred_element_type=jnp.float32)
           + jnp.dot(x_hs, w_hs_ref[...], preferred_element_type=jnp.float32))  # (R, 128)

    # RoPE for every q head and every k head in ONE fused FMA; v passes through
    # (its cos lane is 1, its "rot" weight columns are zero).
    roped = qkv[:, :QKV_W] * cs_ref[0] + qkv[:, QKV_W:] * cs_ref[1]   # (R, 64) = [q|k|v]

    inv_sqrt_d = 1.0 / math.sqrt(HEAD_DIM)
    bias = bias_ref[...]                                              # (R, R) block-diag batch mask

    # K/V slices hoisted per KV head (GQA: reused by both query heads)
    k_heads = [roped[:, Q_W + kh * HEAD_DIM: Q_W + (kh + 1) * HEAD_DIM]
               for kh in range(NUM_KV_HEADS)]
    v_heads = [roped[:, Q_W + KV_W + kh * HEAD_DIM: Q_W + KV_W + (kh + 1) * HEAD_DIM]
               for kh in range(NUM_KV_HEADS)]

    attn_proj = jnp.zeros((rows, HIDDEN), jnp.float32)
    for h in range(NUM_HEADS):                    # static unrolled, 4 iterations
        q_h = roped[:, h * HEAD_DIM:(h + 1) * HEAD_DIM]               # (R, D)
        k_h = k_heads[h // N_REP]
        v_h = v_heads[h // N_REP]

        # both batch elements in one matmul; cross-batch entries masked to -1e30
        scores = jax.lax.dot_general(
            q_h, k_h, (((1,), (1,)), ((), ())),
            preferred_element_type=jnp.float32) * inv_sqrt_d + bias    # (R, R)
        # TODO(synk): no causal mask — matches the unmasked Eagle3 fresh-cache
        # reference path (attention_mask=None).
        scores = scores - jnp.max(scores, axis=-1, keepdims=True)
        p = jnp.exp(scores)
        p = p * pl.reciprocal(jnp.sum(p, axis=-1, keepdims=True), approx=True)

        head_out = jnp.dot(p, v_h, preferred_element_type=jnp.float32)          # (R, D)
        # per-head slice of W_o, accumulated -> no concat of head outputs
        attn_proj = attn_proj + jnp.dot(head_out.astype(jnp.bfloat16), wo_ref[h],
                                        preferred_element_type=jnp.float32)     # (R, H)

    hidden = residual + attn_proj
    hn = rms(hidden, ln_post_ref).astype(jnp.bfloat16)

    # fused gate|up projection, lane-dense width 2I = 128
    gu = jnp.dot(hn, wgu_ref[...], preferred_element_type=jnp.float32)          # (R, 2I)
    g = gu[:, :INTERMEDIATE]
    u = gu[:, INTERMEDIATE:]
    act = (g * jax.lax.logistic(g) * u).astype(jnp.bfloat16)                    # SiLU(g) * u

    out = hidden + jnp.dot(act, wd_ref[...], preferred_element_type=jnp.float32)
    o_ref[...] = out.astype(o_ref.dtype)


def decoder_layer_forward(input_embeds, hidden_states, fused):
    Bx, Sx, H = hidden_states.shape
    R = Bx * Sx
    ie = input_embeds.reshape(R, H)       # batch folded into rows (single kernel step)
    hs = hidden_states.reshape(R, H)
    out = pl.pallas_call(
        _decoder_layer_kernel,
        out_shape=jax.ShapeDtypeStruct((R, H), hidden_states.dtype),
    )(ie, hs,
      fused["ln_in"], fused["ln_hid"], fused["ln_post"],
      fused["w_ie"], fused["w_hs"], fused["wo_r"], fused["wgu"], fused["wd"],
      fused["cs"], fused["bias"])
    return out.reshape(Bx, Sx, H)


# --------------------------- pure-JAX reference ------------------------------
def reference_forward(input_embeds, hidden_states, p):
    def rms(x, w):
        xf = x.astype(jnp.float32)
        var = jnp.mean(xf * xf, axis=-1, keepdims=True)
        return (w * (xf * jax.lax.rsqrt(var + EPS))).astype(x.dtype)

    def rotate_half(x):
        d = x.shape[-1]
        return jnp.concatenate([-x[..., d // 2:], x[..., :d // 2]], axis=-1)

    Bx, Sx, H = hidden_states.shape
    residual = hidden_states
    ie = rms(input_embeds, p["input_ln_w"])
    hs = rms(hidden_states, p["hidden_ln_w"])
    x = jnp.concatenate([ie, hs], axis=-1)

    q = (x @ p["wq"]).reshape(Bx, Sx, NUM_HEADS, HEAD_DIM).transpose(0, 2, 1, 3)
    k = (x @ p["wk"]).reshape(Bx, Sx, NUM_KV_HEADS, HEAD_DIM).transpose(0, 2, 1, 3)
    v = (x @ p["wv"]).reshape(Bx, Sx, NUM_KV_HEADS, HEAD_DIM).transpose(0, 2, 1, 3)

    cos, sin = llama_rotary_embedding(Sx, HEAD_DIM)
    cos = cos[None, None]
    sin = sin[None, None]
    q = q * cos + rotate_half(q) * sin
    k = k * cos + rotate_half(k) * sin
    k = jnp.repeat(k, N_REP, axis=1)
    v = jnp.repeat(v, N_REP, axis=1)

    scores = jnp.einsum("bhqd,bhkd->bhqk", q, k) / math.sqrt(HEAD_DIM)
    pw = jax.nn.softmax(scores.astype(jnp.float32), axis=-1)
    attn = jnp.einsum("bhqk,bhkd->bhqd", pw, v)
    attn = attn.transpose(0, 2, 1, 3).reshape(Bx, Sx, H) @ p["wo"]

    hidden = residual + attn
    residual2 = hidden
    hn = rms(hidden, p["post_ln_w"])
    g = hn @ p["wg"]
    u = hn @ p["wu"]
    return residual2 + (jax.nn.silu(g) * u) @ p["wd"]


# ---------------------------------- main -------------------------------------
if __name__ == "__main__":
    key = jax.random.PRNGKey(0)
    ks = jax.random.split(key, 12)
    scale = 0.05
    params = {
        "input_ln_w": 1.0 + 0.01 * jax.random.normal(ks[0], (HIDDEN,), jnp.float32),
        "hidden_ln_w": 1.0 + 0.01 * jax.random.normal(ks[1], (HIDDEN,), jnp.float32),
        "post_ln_w": 1.0 + 0.01 * jax.random.normal(ks[2], (HIDDEN,), jnp.float32),
        "wq": scale * jax.random.normal(ks[3], (2 * HIDDEN, NUM_HEADS * HEAD_DIM), jnp.float32),
        "wk": scale * jax.random.normal(ks[4], (2 * HIDDEN, NUM_KV_HEADS * HEAD_DIM), jnp.float32),
        "wv": scale * jax.random.normal(ks[5], (2 * HIDDEN, NUM_KV_HEADS * HEAD_DIM), jnp.float32),
        "wo": scale * jax.random.normal(ks[6], (NUM_HEADS * HEAD_DIM, HIDDEN), jnp.float32),
        "wg": scale * jax.random.normal(ks[7], (HIDDEN, INTERMEDIATE), jnp.float32),
        "wu": scale * jax.random.normal(ks[8], (HIDDEN, INTERMEDIATE), jnp.float32),
        "wd": scale * jax.random.normal(ks[9], (INTERMEDIATE, HIDDEN), jnp.float32),
    }

    input_embeds = jax.random.normal(ks[10], (B, S, HIDDEN), jnp.float32)
    hidden_states = jax.random.normal(ks[11], (B, S, HIDDEN), jnp.float32)

    # host-side, once: rotary cache (== LlamaRotaryEmbedding buffers), fused /
    # rotate_half-folded weights, tiled cos|sin pack, batch block mask
    fused = prepare_fused_inputs(params, B, S)

    out = decoder_layer_forward(input_embeds, hidden_states, fused)
    out = jax.block_until_ready(out)

    ref = reference_forward(input_embeds, hidden_states, params)
    assert out.shape == (B, S, HIDDEN)
    max_err = float(jnp.max(jnp.abs(out - ref)))
    assert jnp.allclose(out, ref, atol=1e-2, rtol=1e-2), max_err

    print("KERNEL_OK")
</pallas_src>

<mosaic_0001>
module attributes {stable_mosaic.version = 11 : i64} {
  func.func @_decoder_layer_kernel(%arg0: memref<16x32xf32, #tpu.memory_space<vmem>>, %arg1: memref<16x32xf32, #tpu.memory_space<vmem>>, %arg2: memref<1x32xf32, #tpu.memory_space<vmem>>, %arg3: memref<1x32xf32, #tpu.memory_space<vmem>>, %arg4: memref<1x32xf32, #tpu.memory_space<vmem>>, %arg5: memref<32x128xbf16, #tpu.memory_space<vmem>>, %arg6: memref<32x128xbf16, #tpu.memory_space<vmem>>, %arg7: memref<4x8x32xbf16, #tpu.memory_space<vmem>>, %arg8: memref<32x128xbf16, #tpu.memory_space<vmem>>, %arg9: memref<64x32xbf16, #tpu.memory_space<vmem>>, %arg10: memref<2x16x64xf32, #tpu.memory_space<vmem>>, %arg11: memref<16x16xf32, #tpu.memory_space<vmem>>, %arg12: memref<16x32xf32, #tpu.memory_space<vmem>>) attributes {dimension_semantics = [], scalar_prefetch = 0 : i64, scratch_operands = 0 : i64, tpu.core_type = #tpu.core_type<tc>} {
    %c0 = arith.constant 0 : index
    %c0_0 = arith.constant 0 : index
    %0 = vector.load %arg0[%c0, %c0_0] : memref<16x32xf32, #tpu.memory_space<vmem>>, vector<16x32xf32>
    %c0_1 = arith.constant 0 : index
    %c0_2 = arith.constant 0 : index
    %1 = vector.load %arg1[%c0_1, %c0_2] : memref<16x32xf32, #tpu.memory_space<vmem>>, vector<16x32xf32>
    %2 = arith.mulf %0, %0 : vector<16x32xf32>
    %cst = arith.constant dense<0.000000e+00> : vector<16xf32>
    %3 = vector.multi_reduction <add>, %2, %cst [1] : vector<16x32xf32> to vector<16xf32>
    %4 = vector.shape_cast %3 : vector<16xf32> to vector<16x1xf32>
    %cst_3 = arith.constant 3.200000e+01 : f32
    %5 = vector.broadcast %cst_3 : f32 to vector<16x1xf32>
    %6 = arith.divf %4, %5 : vector<16x1xf32>
    %c0_4 = arith.constant 0 : index
    %c0_5 = arith.constant 0 : index
    %7 = vector.load %arg2[%c0_4, %c0_5] : memref<1x32xf32, #tpu.memory_space<vmem>>, vector<1x32xf32>
    %cst_6 = arith.constant 9.99999997E-7 : f32
    %8 = vector.broadcast %cst_6 : f32 to vector<16x1xf32>
    %9 = arith.addf %6, %8 : vector<16x1xf32>
    %10 = math.rsqrt %9 : vector<16x1xf32>
    %11 = vector.broadcast %10 : vector<16x1xf32> to vector<16x32xf32>
    %12 = arith.mulf %0, %11 : vector<16x32xf32>
    %13 = vector.broadcast %7 : vector<1x32xf32> to vector<16x32xf32>
    %14 = arith.mulf %13, %12 : vector<16x32xf32>
    %15 = arith.truncf %14 : vector<16x32xf32> to vector<16x32xbf16>
    %16 = arith.mulf %1, %1 : vector<16x32xf32>
    %cst_7 = arith.constant dense<0.000000e+00> : vector<16xf32>
    %17 = vector.multi_reduction <add>, %16, %cst_7 [1] : vector<16x32xf32> to vector<16xf32>
    %18 = vector.shape_cast %17 : vector<16xf32> to vector<16x1xf32>
    %cst_8 = arith.constant 3.200000e+01 : f32
    %19 = vector.broadcast %cst_8 : f32 to vector<16x1xf32>
    %20 = arith.divf %18, %19 : vector<16x1xf32>
    %c0_9 = arith.constant 0 : index
    %c0_10 = arith.constant 0 : index
    %21 = vector.load %arg3[%c0_9, %c0_10] : memref<1x32xf32, #tpu.memory_space<vmem>>, vector<1x32xf32>
    %cst_11 = arith.constant 9.99999997E-7 : f32
    %22 = vector.broadcast %cst_11 : f32 to vector<16x1xf32>
    %23 = arith.addf %20, %22 : vector<16x1xf32>
    %24 = math.rsqrt %23 : vector<16x1xf32>
    %25 = vector.broadcast %24 : vector<16x1xf32> to vector<16x32xf32>
    %26 = arith.mulf %1, %25 : vector<16x32xf32>
    %27 = vector.broadcast %21 : vector<1x32xf32> to vector<16x32xf32>
    %28 = arith.mulf %27, %26 : vector<16x32xf32>
    %29 = arith.truncf %28 : vector<16x32xf32> to vector<16x32xbf16>
    %c0_12 = arith.constant 0 : index
    %c0_13 = arith.constant 0 : index
    %30 = vector.load %arg5[%c0_12, %c0_13] : memref<32x128xbf16, #tpu.memory_space<vmem>>, vector<32x128xbf16>
    %cst_14 = arith.constant dense<0.000000e+00> : vector<16x128xf32>
    %31 = tpu.matmul %15, %30, %cst_14 {dimension_numbers = #tpu.dot_dimension_numbers<[1], [0], [0], [1], [0, 0, 1, 1], [], []>} : vector<16x32xbf16>, vector<32x128xbf16>, vector<16x128xf32> -> vector<16x128xf32>
    %c0_15 = arith.constant 0 : index
    %c0_16 = arith.constant 0 : index
    %32 = vector.load %arg6[%c0_15, %c0_16] : memref<32x128xbf16, #tpu.memory_space<vmem>>, vector<32x128xbf16>
    %cst_17 = arith.constant dense<0.000000e+00> : vector<16x128xf32>
    %33 = tpu.matmul %29, %32, %cst_17 {dimension_numbers = #tpu.dot_dimension_numbers<[1], [0], [0], [1], [0, 0, 1, 1], [], []>} : vector<16x32xbf16>, vector<32x128xbf16>, vector<16x128xf32> -> vector<16x128xf32>
    %34 = arith.addf %31, %33 : vector<16x128xf32>
    %35 = vector.extract_strided_slice %34 {offsets = [0, 0], sizes = [16, 64], strides = [1, 1]} : vector<16x128xf32> to vector<16x64xf32>
    %c0_18 = arith.constant 0 : index
    %c0_19 = arith.constant 0 : index
    %c0_20 = arith.constant 0 : index
    %36 = vector.load %arg10[%c0_18, %c0_19, %c0_20] : memref<2x16x64xf32, #tpu.memory_space<vmem>>, vector<1x16x64xf32>
    %37 = vector.shape_cast %36 : vector<1x16x64xf32> to vector<16x64xf32>
    %38 = arith.mulf %35, %37 : vector<16x64xf32>
    %39 = vector.extract_strided_slice %34 {offsets = [0, 64], sizes = [16, 64], strides = [1, 1]} : vector<16x128xf32> to vector<16x64xf32>
    %c1 = arith.constant 1 : index
    %c0_21 = arith.constant 0 : index
    %c0_22 = arith.constant 0 : index
    %40 = vector.load %arg10[%c1, %c0_21, %c0_22] : memref<2x16x64xf32, #tpu.memory_space<vmem>>, vector<1x16x64xf32>
    %41 = vector.shape_cast %40 : vector<1x16x64xf32> to vector<16x64xf32>
    %42 = arith.mulf %39, %41 : vector<16x64xf32>
    %43 = arith.addf %38, %42 : vector<16x64xf32>
    %c0_23 = arith.constant 0 : index
    %c0_24 = arith.constant 0 : index
    %44 = vector.load %arg11[%c0_23, %c0_24] : memref<16x16xf32, #tpu.memory_space<vmem>>, vector<16x16xf32>
    %45 = vector.extract_strided_slice %43 {offsets = [0, 32], sizes = [16, 8], strides = [1, 1]} : vector<16x64xf32> to vector<16x8xf32>
    %46 = vector.extract_strided_slice %43 {offsets = [0, 40], sizes = [16, 8], strides = [1, 1]} : vector<16x64xf32> to vector<16x8xf32>
    %47 = vector.extract_strided_slice %43 {offsets = [0, 48], sizes = [16, 8], strides = [1, 1]} : vector<16x64xf32> to vector<16x8xf32>
    %48 = vector.extract_strided_slice %43 {offsets = [0, 56], sizes = [16, 8], strides = [1, 1]} : vector<16x64xf32> to vector<16x8xf32>
    %cst_25 = arith.constant 0.000000e+00 : f32
    %49 = vector.broadcast %cst_25 : f32 to vector<16x32xf32>
    %50 = vector.extract_strided_slice %43 {offsets = [0, 0], sizes = [16, 8], strides = [1, 1]} : vector<16x64xf32> to vector<16x8xf32>
    %cst_26 = arith.constant dense<0.000000e+00> : vector<16x16xf32>
    %51 = tpu.matmul %50, %45, %cst_26 {dimension_numbers = #tpu.dot_dimension_numbers<[1], [1], [0], [0], [0, 0, 1, 0], [], []>} : vector<16x8xf32>, vector<16x8xf32>, vector<16x16xf32> -> vector<16x16xf32>
    %cst_27 = arith.constant 0.353553385 : f32
    %52 = vector.broadcast %cst_27 : f32 to vector<16x16xf32>
    %53 = arith.mulf %51, %52 : vector<16x16xf32>
    %54 = arith.addf %53, %44 : vector<16x16xf32>
    %cst_28 = arith.constant dense<0xFF800000> : vector<16xf32>
    %55 = vector.multi_reduction <maximumf>, %54, %cst_28 [1] : vector<16x16xf32> to vector<16xf32>
    %56 = vector.shape_cast %55 : vector<16xf32> to vector<16x1xf32>
    %57 = vector.broadcast %56 : vector<16x1xf32> to vector<16x16xf32>
    %58 = arith.subf %54, %57 : vector<16x16xf32>
    %59 = math.exp %58 : vector<16x16xf32>
    %cst_29 = arith.constant dense<0.000000e+00> : vector<16xf32>
    %60 = vector.multi_reduction <add>, %59, %cst_29 [1] : vector<16x16xf32> to vector<16xf32>
    %61 = vector.shape_cast %60 : vector<16xf32> to vector<16x1xf32>
    %62 = tpu.reciprocal %61 {approx = true} : vector<16x1xf32> -> vector<16x1xf32>
    %63 = vector.broadcast %62 : vector<16x1xf32> to vector<16x16xf32>
    %64 = arith.mulf %59, %63 : vector<16x16xf32>
    %cst_30 = arith.constant dense<0.000000e+00> : vector<16x8xf32>
    %65 = tpu.matmul %64, %47, %cst_30 {dimension_numbers = #tpu.dot_dimension_numbers<[1], [0], [0], [1], [0, 0, 1, 1], [], []>} : vector<16x16xf32>, vector<16x8xf32>, vector<16x8xf32> -> vector<16x8xf32>
    %66 = arith.truncf %65 : vector<16x8xf32> to vector<16x8xbf16>
    %c0_31 = arith.constant 0 : index
    %c0_32 = arith.constant 0 : index
    %c0_33 = arith.constant 0 : index
    %67 = vector.load %arg7[%c0_31, %c0_32, %c0_33] : memref<4x8x32xbf16, #tpu.memory_space<vmem>>, vector<1x8x32xbf16>
    %68 = vector.shape_cast %67 : vector<1x8x32xbf16> to vector<8x32xbf16>
    %cst_34 = arith.constant dense<0.000000e+00> : vector<16x32xf32>
    %69 = tpu.matmul %66, %68, %cst_34 {dimension_numbers = #tpu.dot_dimension_numbers<[1], [0], [0], [1], [0, 0, 1, 1], [], []>} : vector<16x8xbf16>, vector<8x32xbf16>, vector<16x32xf32> -> vector<16x32xf32>
    %70 = arith.addf %49, %69 : vector<16x32xf32>
    %71 = vector.extract_strided_slice %43 {offsets = [0, 8], sizes = [16, 8], strides = [1, 1]} : vector<16x64xf32> to vector<16x8xf32>
    %cst_35 = arith.constant dense<0.000000e+00> : vector<16x16xf32>
    %72 = tpu.matmul %71, %45, %cst_35 {dimension_numbers = #tpu.dot_dimension_numbers<[1], [1], [0], [0], [0, 0, 1, 0], [], []>} : vector<16x8xf32>, vector<16x8xf32>, vector<16x16xf32> -> vector<16x16xf32>
    %cst_36 = arith.constant 0.353553385 : f32
    %73 = vector.broadcast %cst_36 : f32 to vector<16x16xf32>
    %74 = arith.mulf %72, %73 : vector<16x16xf32>
    %75 = arith.addf %74, %44 : vector<16x16xf32>
    %cst_37 = arith.constant dense<0xFF800000> : vector<16xf32>
    %76 = vector.multi_reduction <maximumf>, %75, %cst_37 [1] : vector<16x16xf32> to vector<16xf32>
    %77 = vector.shape_cast %76 : vector<16xf32> to vector<16x1xf32>
    %78 = vector.broadcast %77 : vector<16x1xf32> to vector<16x16xf32>
    %79 = arith.subf %75, %78 : vector<16x16xf32>
    %80 = math.exp %79 : vector<16x16xf32>
    %cst_38 = arith.constant dense<0.000000e+00> : vector<16xf32>
    %81 = vector.multi_reduction <add>, %80, %cst_38 [1] : vector<16x16xf32> to vector<16xf32>
    %82 = vector.shape_cast %81 : vector<16xf32> to vector<16x1xf32>
    %83 = tpu.reciprocal %82 {approx = true} : vector<16x1xf32> -> vector<16x1xf32>
    %84 = vector.broadcast %83 : vector<16x1xf32> to vector<16x16xf32>
    %85 = arith.mulf %80, %84 : vector<16x16xf32>
    %cst_39 = arith.constant dense<0.000000e+00> : vector<16x8xf32>
    %86 = tpu.matmul %85, %47, %cst_39 {dimension_numbers = #tpu.dot_dimension_numbers<[1], [0], [0], [1], [0, 0, 1, 1], [], []>} : vector<16x16xf32>, vector<16x8xf32>, vector<16x8xf32> -> vector<16x8xf32>
    %87 = arith.truncf %86 : vector<16x8xf32> to vector<16x8xbf16>
    %c1_40 = arith.constant 1 : index
    %c0_41 = arith.constant 0 : index
    %c0_42 = arith.constant 0 : index
    %88 = vector.load %arg7[%c1_40, %c0_41, %c0_42] : memref<4x8x32xbf16, #tpu.memory_space<vmem>>, vector<1x8x32xbf16>
    %89 = vector.shape_cast %88 : vector<1x8x32xbf16> to vector<8x32xbf16>
    %cst_43 = arith.constant dense<0.000000e+00> : vector<16x32xf32>
    %90 = tpu.matmul %87, %89, %cst_43 {dimension_numbers = #tpu.dot_dimension_numbers<[1], [0], [0], [1], [0, 0, 1, 1], [], []>} : vector<16x8xbf16>, vector<8x32xbf16>, vector<16x32xf32> -> vector<16x32xf32>
    %91 = arith.addf %70, %90 : vector<16x32xf32>
    %92 = vector.extract_strided_slice %43 {offsets = [0, 16], sizes = [16, 8], strides = [1, 1]} : vector<16x64xf32> to vector<16x8xf32>
    %cst_44 = arith.constant dense<0.000000e+00> : vector<16x16xf32>
    %93 = tpu.matmul %92, %46, %cst_44 {dimension_numbers = #tpu.dot_dimension_numbers<[1], [1], [0], [0], [0, 0, 1, 0], [], []>} : vector<16x8xf32>, vector<16x8xf32>, vector<16x16xf32> -> vector<16x16xf32>
    %cst_45 = arith.constant 0.353553385 : f32
    %94 = vector.broadcast %cst_45 : f32 to vector<16x16xf32>
    %95 = arith.mulf %93, %94 : vector<16x16xf32>
    %96 = arith.addf %95, %44 : vector<16x16xf32>
    %cst_46 = arith.constant dense<0xFF800000> : vector<16xf32>
    %97 = vector.multi_reduction <maximumf>, %96, %cst_46 [1] : vector<16x16xf32> to vector<16xf32>
    %98 = vector.shape_cast %97 : vector<16xf32> to vector<16x1xf32>
    %99 = vector.broadcast %98 : vector<16x1xf32> to vector<16x16xf32>
    %100 = arith.subf %96, %99 : vector<16x16xf32>
    %101 = math.exp %100 : vector<16x16xf32>
    %cst_47 = arith.constant dense<0.000000e+00> : vector<16xf32>
    %102 = vector.multi_reduction <add>, %101, %cst_47 [1] : vector<16x16xf32> to vector<16xf32>
    %103 = vector.shape_cast %102 : vector<16xf32> to vector<16x1xf32>
    %104 = tpu.reciprocal %103 {approx = true} : vector<16x1xf32> -> vector<16x1xf32>
    %105 = vector.broadcast %104 : vector<16x1xf32> to vector<16x16xf32>
    %106 = arith.mulf %101, %105 : vector<16x16xf32>
    %cst_48 = arith.constant dense<0.000000e+00> : vector<16x8xf32>
    %107 = tpu.matmul %106, %48, %cst_48 {dimension_numbers = #tpu.dot_dimension_numbers<[1], [0], [0], [1], [0, 0, 1, 1], [], []>} : vector<16x16xf32>, vector<16x8xf32>, vector<16x8xf32> -> vector<16x8xf32>
    %108 = arith.truncf %107 : vector<16x8xf32> to vector<16x8xbf16>
    %c2 = arith.constant 2 : index
    %c0_49 = arith.constant 0 : index
    %c0_50 = arith.constant 0 : index
    %109 = vector.load %arg7[%c2, %c0_49, %c0_50] : memref<4x8x32xbf16, #tpu.memory_space<vmem>>, vector<1x8x32xbf16>
    %110 = vector.shape_cast %109 : vector<1x8x32xbf16> to vector<8x32xbf16>
    %cst_51 = arith.constant dense<0.000000e+00> : vector<16x32xf32>
    %111 = tpu.matmul %108, %110, %cst_51 {dimension_numbers = #tpu.dot_dimension_numbers<[1], [0], [0], [1], [0, 0, 1, 1], [], []>} : vector<16x8xbf16>, vector<8x32xbf16>, vector<16x32xf32> -> vector<16x32xf32>
    %112 = arith.addf %91, %111 : vector<16x32xf32>
    %113 = vector.extract_strided_slice %43 {offsets = [0, 24], sizes = [16, 8], strides = [1, 1]} : vector<16x64xf32> to vector<16x8xf32>
    %cst_52 = arith.constant dense<0.000000e+00> : vector<16x16xf32>
    %114 = tpu.matmul %113, %46, %cst_52 {dimension_numbers = #tpu.dot_dimension_numbers<[1], [1], [0], [0], [0, 0, 1, 0], [], []>} : vector<16x8xf32>, vector<16x8xf32>, vector<16x16xf32> -> vector<16x16xf32>
    %cst_53 = arith.constant 0.353553385 : f32
    %115 = vector.broadcast %cst_53 : f32 to vector<16x16xf32>
    %116 = arith.mulf %114, %115 : vector<16x16xf32>
    %117 = arith.addf %116, %44 : vector<16x16xf32>
    %cst_54 = arith.constant dense<0xFF800000> : vector<16xf32>
    %118 = vector.multi_reduction <maximumf>, %117, %cst_54 [1] : vector<16x16xf32> to vector<16xf32>
    %119 = vector.shape_cast %118 : vector<16xf32> to vector<16x1xf32>
    %120 = vector.broadcast %119 : vector<16x1xf32> to vector<16x16xf32>
    %121 = arith.subf %117, %120 : vector<16x16xf32>
    %122 = math.exp %121 : vector<16x16xf32>
    %cst_55 = arith.constant dense<0.000000e+00> : vector<16xf32>
    %123 = vector.multi_reduction <add>, %122, %cst_55 [1] : vector<16x16xf32> to vector<16xf32>
    %124 = vector.shape_cast %123 : vector<16xf32> to vector<16x1xf32>
    %125 = tpu.reciprocal %124 {approx = true} : vector<16x1xf32> -> vector<16x1xf32>
    %126 = vector.broadcast %125 : vector<16x1xf32> to vector<16x16xf32>
    %127 = arith.mulf %122, %126 : vector<16x16xf32>
    %cst_56 = arith.constant dense<0.000000e+00> : vector<16x8xf32>
    %128 = tpu.matmul %127, %48, %cst_56 {dimension_numbers = #tpu.dot_dimension_numbers<[1], [0], [0], [1], [0, 0, 1, 1], [], []>} : vector<16x16xf32>, vector<16x8xf32>, vector<16x8xf32> -> vector<16x8xf32>
    %129 = arith.truncf %128 : vector<16x8xf32> to vector<16x8xbf16>
    %c3 = arith.constant 3 : index
    %c0_57 = arith.constant 0 : index
    %c0_58 = arith.constant 0 : index
    %130 = vector.load %arg7[%c3, %c0_57, %c0_58] : memref<4x8x32xbf16, #tpu.memory_space<vmem>>, vector<1x8x32xbf16>
    %131 = vector.shape_cast %130 : vector<1x8x32xbf16> to vector<8x32xbf16>
    %cst_59 = arith.constant dense<0.000000e+00> : vector<16x32xf32>
    %132 = tpu.matmul %129, %131, %cst_59 {dimension_numbers = #tpu.dot_dimension_numbers<[1], [0], [0], [1], [0, 0, 1, 1], [], []>} : vector<16x8xbf16>, vector<8x32xbf16>, vector<16x32xf32> -> vector<16x32xf32>
    %133 = arith.addf %112, %132 : vector<16x32xf32>
    %134 = arith.addf %1, %133 : vector<16x32xf32>
    %135 = arith.mulf %134, %134 : vector<16x32xf32>
    %cst_60 = arith.constant dense<0.000000e+00> : vector<16xf32>
    %136 = vector.multi_reduction <add>, %135, %cst_60 [1] : vector<16x32xf32> to vector<16xf32>
    %137 = vector.shape_cast %136 : vector<16xf32> to vector<16x1xf32>
    %cst_61 = arith.constant 3.200000e+01 : f32
    %138 = vector.broadcast %cst_61 : f32 to vector<16x1xf32>
    %139 = arith.divf %137, %138 : vector<16x1xf32>
    %c0_62 = arith.constant 0 : index
    %c0_63 = arith.constant 0 : index
    %140 = vector.load %arg4[%c0_62, %c0_63] : memref<1x32xf32, #tpu.memory_space<vmem>>, vector<1x32xf32>
    %cst_64 = arith.constant 9.99999997E-7 : f32
    %141 = vector.broadcast %cst_64 : f32 to vector<16x1xf32>
    %142 = arith.addf %139, %141 : vector<16x1xf32>
    %143 = math.rsqrt %142 : vector<16x1xf32>
    %144 = vector.broadcast %143 : vector<16x1xf32> to vector<16x32xf32>
    %145 = arith.mulf %134, %144 : vector<16x32xf32>
    %146 = vector.broadcast %140 : vector<1x32xf32> to vector<16x32xf32>
    %147 = arith.mulf %146, %145 : vector<16x32xf32>
    %148 = arith.truncf %147 : vector<16x32xf32> to vector<16x32xbf16>
    %c0_65 = arith.constant 0 : index
    %c0_66 = arith.constant 0 : index
    %149 = vector.load %arg8[%c0_65, %c0_66] : memref<32x128xbf16, #tpu.memory_space<vmem>>, vector<32x128xbf16>
    %cst_67 = arith.constant dense<0.000000e+00> : vector<16x128xf32>
    %150 = tpu.matmul %148, %149, %cst_67 {dimension_numbers = #tpu.dot_dimension_numbers<[1], [0], [0], [1], [0, 0, 1, 1], [], []>} : vector<16x32xbf16>, vector<32x128xbf16>, vector<16x128xf32> -> vector<16x128xf32>
    %151 = vector.extract_strided_slice %150 {offsets = [0, 0], sizes = [16, 64], strides = [1, 1]} : vector<16x128xf32> to vector<16x64xf32>
    %152 = vector.extract_strided_slice %150 {offsets = [0, 64], sizes = [16, 64], strides = [1, 1]} : vector<16x128xf32> to vector<16x64xf32>
    %153 = arith.negf %151 : vector<16x64xf32>
    %154 = math.exp %153 : vector<16x64xf32>
    %cst_68 = arith.constant 1.000000e+00 : f32
    %155 = vector.broadcast %cst_68 : f32 to vector<16x64xf32>
    %156 = arith.addf %155, %154 : vector<16x64xf32>
    %157 = arith.divf %155, %156 : vector<16x64xf32>
    %158 = arith.mulf %151, %157 : vector<16x64xf32>
    %159 = arith.mulf %158, %152 : vector<16x64xf32>
    %160 = arith.truncf %159 : vector<16x64xf32> to vector<16x64xbf16>
    %c0_69 = arith.constant 0 : index
    %c0_70 = arith.constant 0 : index
    %161 = vector.load %arg9[%c0_69, %c0_70] : memref<64x32xbf16, #tpu.memory_space<vmem>>, vector<64x32xbf16>
    %cst_71 = arith.constant dense<0.000000e+00> : vector<16x32xf32>
    %162 = tpu.matmul %160, %161, %cst_71 {dimension_numbers = #tpu.dot_dimension_numbers<[1], [0], [0], [1], [0, 0, 1, 1], [], []>} : vector<16x64xbf16>, vector<64x32xbf16>, vector<16x32xf32> -> vector<16x32xf32>
    %163 = arith.addf %134, %162 : vector<16x32xf32>
    %c0_72 = arith.constant 0 : index
    %c0_73 = arith.constant 0 : index
    %164 = vector.load %arg12[%c0_72, %c0_73] : memref<16x32xf32, #tpu.memory_space<vmem>>, vector<16x32xf32>
    tpu.vector_store %arg12[%c0_72, %c0_73], %163 {strides = array<i32>} : memref<16x32xf32, #tpu.memory_space<vmem>>, vector<16x32xf32>,
    return
  }
}

</mosaic_0001>

<bundles_post_ra>
// kernel: tpu_custom_call.1
= control target key start
LH: loop header
LB: loop body
LE: loop exit
PB: predicated region body
PF: predicated region fallthrough
CT: control target
= control target key end

     0   :  { %17 = vsyncpa [#allocation3], 0  ;;  %s2400_s0 = inlined_call_operand.vmem [shape: f32[16,32], index: 0, kind: input, shape index: {}]   ;;  %s2401_s1 = inlined_call_operand.vmem [shape: f32[16,32], index: 1, kind: input, shape index: {}]   ;;  %s2402_s2 = inlined_call_operand.hbm [shape: f32[1,32], index: 2, kind: input, shape index: {}]   ;;  %s2403_s3 = inlined_call_operand.hbm [shape: f32[1,32], index: 3, kind: input, shape index: {}]   ;;  %s2404_s4 = inlined_call_operand.hbm [shape: f32[1,32], index: 4, kind: input, shape index: {}]   ;;  %s2405_s5 = inlined_call_operand.hbm [shape: bf16[32,128], index: 5, kind: input, shape index: {}]   ;;  %s2406_s6 = inlined_call_operand.hbm [shape: bf16[32,128], index: 6, kind: input, shape index: {}]   ;;  %s2407_s7 = inlined_call_operand.hbm [shape: bf16[4,8,32], index: 7, kind: input, shape index: {}]   ;;  %s2408_s8 = inlined_call_operand.hbm [shape: bf16[32,128], index: 8, kind: input, shape index: {}]   ;;  %s2409_s9 = inlined_call_operand.vmem [shape: bf16[64,32], index: 9, kind: input, shape index: {}]   ;;  %s2410_s10 = inlined_call_operand.vmem [shape: f32[2,16,64], index: 10, kind: input, shape index: {}]   ;;  %s2411_s11 = inlined_call_operand.hbm [shape: f32[16,16], index: 11, kind: input, shape index: {}]   ;;  %s2412_s12 = inlined_call_operand.hbm [shape: f32[16,32], index: 12, kind: output, shape index: {}]  }
   0x1   :  { %18 = vsyncpa [#allocation6], 0 }
   0x2   :  { %19 = vsyncpa [#allocation9], 0 }
   0x3   :  { %20 = vsyncpa [#allocation12], 0 }
   0x4   :  { %21 = vsyncpa [#allocation15], 0 }
   0x5   :  { %22 = vsyncpa [#allocation4], 0  ;;  %s2055_s21 = smov [#allocation5]   ;;  %s2056_s23 = smov [#allocation8]  }
   0x6   :  { %s43_s22 = sshll.u32 %s2055_s21, 4  ;;  %s62_s24 = sshll.u32 %s2056_s23, 4  ;;  %s44_s22 = int_to_ptr.vmem [resolvable:$true] %s43_s22  ;;  %s63_s24 = int_to_ptr.vmem [resolvable:$true] %s62_s24 }
   0x7   :  { %s1871_s25 = scalar_lea.vmem %s44_s22, 16  ;;  %s1875_s26 = scalar_lea.vmem %s44_s22, 32 }
   0x8   :  { %p1872_p0 = scmp.ne.s32.totalorder %s44_s22, %s1871_s25  ;;  %p1876_p1 = scmp.lt.s32.totalorder %s44_s22, %s44_s22 }
   0x9   :  { %p1877_p2 = scmp.lt.s32.totalorder %s1875_s26, %s1871_s25 }
   0xb   :  { %p1878_p3 = por %p1877_p2, %p1876_p1 }
   0xd   :  { %p1879_p4 = pnand %p1878_p3, %p1872_p0 }
   0xf   :  { %1882 = shalt.err (!%p1879_p4)
}
  0x10   :  { %46 = dma.hbm_to_vmem [thread:$0]  %s2403_s3, 16, %s44_s22, [#allocation6]  }
  0x11   :  { %s1891_s29 = scalar_lea.vmem %s63_s24, 256  ;;  %p1896_p6 = scmp.lt.s32.totalorder %s63_s24, %s63_s24 }
  0x12   :  { %p1892_p5 = scmp.ne.s32.totalorder %s63_s24, %s1891_s29  ;;  %p1897_p7 = scmp.lt.s32.totalorder %s1891_s29, %s1891_s29 }
  0x14   :  { %p1898_p8 = por %p1897_p7, %p1896_p6 }
  0x16   :  { %p1899_p9 = pnand %p1898_p8, %p1892_p5 }
  0x18   :  { %1902 = shalt.err (!%p1899_p9)
}
  0x19   :  { %s2057_s30 = smov 64   ;;  %s2058_s13 = smov 4  }
  0x1a   :  { %68 = dma.hbm_to_vmem [thread:$0]  %s2405_s5, 256, %s63_s24, [#allocation9], %s2057_s30, %s2057_s30, %s2058_s13  }
  0x1b   :  { %s2059_s16 = smov [#allocation11]   ;;  %s2060_s18 = smov [#allocation2]  }
  0x1c   :  { %s86_s17 = sshll.u32 %s2059_s16, 4  ;;  %s33_s3 = sshll.u32 %s2060_s18, 4  ;;  %s87_s17 = int_to_ptr.vmem [resolvable:$true] %s86_s17  ;;  %s34_s3 = int_to_ptr.vmem [resolvable:$true] %s33_s3 }
  0x1d   :  { %s1911_s19 = scalar_lea.vmem %s87_s17, 256  ;;  %p1916_p11 = scmp.lt.s32.totalorder %s87_s17, %s87_s17 }
  0x1e   :  { %p1912_p10 = scmp.ne.s32.totalorder %s87_s17, %s1911_s19  ;;  %p1917_p12 = scmp.lt.s32.totalorder %s1911_s19, %s1911_s19 }
  0x20   :  { %p1918_p13 = por %p1917_p12, %p1916_p11 }
  0x22   :  { %p1919_p0 = pnand %p1918_p13, %p1912_p10 }
  0x24   :  { %1922 = shalt.err (!%p1919_p0)
}
  0x25   :  { %92 = dma.hbm_to_vmem [thread:$0]  %s2407_s7, 256, %s87_s17, [#allocation12], %s2057_s30, %s2057_s30, %s2058_s13  }
  0x26   :  { %s1931_s5 = scalar_lea.vmem %s34_s3, 16  ;;  %s1935_s22 = scalar_lea.vmem %s34_s3, 32 }
  0x27   :  { %p1932_p1 = scmp.ne.s32.totalorder %s34_s3, %s1931_s5  ;;  %p1936_p2 = scmp.lt.s32.totalorder %s34_s3, %s34_s3 }
  0x28   :  { %p1937_p3 = scmp.lt.s32.totalorder %s1935_s22, %s1931_s5 }
  0x2a   :  { %p1938_p4 = por %p1937_p3, %p1936_p2 }
  0x2c   :  { %p1939_p5 = pnand %p1938_p4, %p1932_p1 }
  0x2e   :  { %1942 = shalt.err (!%p1939_p5)
}
  0x2f   :  { %36 = dma.hbm_to_vmem [thread:$0]  %s2402_s2, 16, %s34_s3, [#allocation3]  }
  0x30   :  { %s2061_s25 = smov [#allocation7]   ;;  %s2062_s27 = smov [#allocation10]  }
  0x31   :  { %s53_s26 = sshll.u32 %s2061_s25, 4  ;;  %s74_s28 = sshll.u32 %s2062_s27, 4  ;;  %s54_s26 = int_to_ptr.vmem [resolvable:$true] %s53_s26  ;;  %s75_s28 = int_to_ptr.vmem [resolvable:$true] %s74_s28 }
  0x32   :  { %s1951_s29 = scalar_lea.vmem %s54_s26, 16  ;;  %s1955_s7 = scalar_lea.vmem %s54_s26, 32 }
  0x33   :  { %p1952_p6 = scmp.ne.s32.totalorder %s54_s26, %s1951_s29  ;;  %p1956_p7 = scmp.lt.s32.totalorder %s54_s26, %s54_s26 }
  0x34   :  { %p1957_p8 = scmp.lt.s32.totalorder %s1955_s7, %s1951_s29 }
  0x36   :  { %p1958_p9 = por %p1957_p8, %p1956_p7 }
  0x38   :  { %p1959_p10 = pnand %p1958_p9, %p1952_p6 }
  0x3a   :  { %1962 = shalt.err (!%p1959_p10)
}
  0x3b   :  { %56 = dma.hbm_to_vmem [thread:$0]  %s2404_s4, 16, %s54_s26, [#allocation6]  }
  0x3c   :  { %s1971_s16 = scalar_lea.vmem %s75_s28, 256  ;;  %p1976_p12 = scmp.lt.s32.totalorder %s75_s28, %s75_s28 }
  0x3d   :  { %p1972_p11 = scmp.ne.s32.totalorder %s75_s28, %s1971_s16  ;;  %p1977_p13 = scmp.lt.s32.totalorder %s1971_s16, %s1971_s16 }
  0x3f   :  { %p1978_p0 = por %p1977_p13, %p1976_p12 }
  0x41   :  { %p1979_p1 = pnand %p1978_p0, %p1972_p11 }
  0x43   :  { %1982 = shalt.err (!%p1979_p1)
}
  0x44   :  { %80 = dma.hbm_to_vmem [thread:$0]  %s2406_s6, 256, %s75_s28, [#allocation9], %s2057_s30, %s2057_s30, %s2058_s13  }
  0x45   :  { %s2063_s18 = smov [#allocation13]   ;;  %s2064_s19 = smov [#allocation14]  }
  0x46   :  { %s98_s3 = sshll.u32 %s2063_s18, 4  ;;  %s114_s20 = sshll.u32 %s2064_s19, 4  ;;  %s99_s3 = int_to_ptr.vmem [resolvable:$true] %s98_s3  ;;  %s115_s20 = int_to_ptr.vmem [resolvable:$true] %s114_s20 }
  0x47   :  { %s1991_s4 = scalar_lea.vmem %s99_s3, 256  ;;  %p1996_p3 = scmp.lt.s32.totalorder %s99_s3, %s99_s3 }
  0x48   :  { %p1992_p2 = scmp.ne.s32.totalorder %s99_s3, %s1991_s4  ;;  %p1997_p4 = scmp.lt.s32.totalorder %s1991_s4, %s1991_s4 }
  0x4a   :  { %p1998_p5 = por %p1997_p4, %p1996_p3 }
  0x4c   :  { %p1999_p6 = pnand %p1998_p5, %p1992_p2 }
  0x4e   :  { %2002 = shalt.err (!%p1999_p6)
}
  0x4f   :  { %104 = dma.hbm_to_vmem [thread:$0]  %s2408_s8, 256, %s99_s3, [#allocation12], %s2057_s30, %s2057_s30, %s2058_s13  }
  0x50   :  { %s2011_s6 = scalar_lea.vmem %s115_s20, 256  ;;  %p2016_p8 = scmp.lt.s32.totalorder %s115_s20, %s115_s20 }
  0x51   :  { %p2012_p7 = scmp.ne.s32.totalorder %s115_s20, %s2011_s6  ;;  %p2017_p9 = scmp.lt.s32.totalorder %s2011_s6, %s2011_s6 }
  0x53   :  { %p2018_p10 = por %p2017_p9, %p2016_p8 }
  0x55   :  { %p2019_p11 = pnand %p2018_p10, %p2012_p7 }
  0x57   :  { %2022 = shalt.err (!%p2019_p11)
}
  0x58   :  { %s2065_s22 = smov 128   ;;  %s2066_s23 = smov 8  }
  0x59   :  { %120 = dma.hbm_to_vmem [thread:$0]  %s2411_s11, 256, %s115_s20, [#allocation15], %s2065_s22, %s2065_s22, %s2066_s23  }
  0x5a   :  { %2043 = dma.done.wait [#allocation3], 16  }
  0x5b   :  { %2044 = vsyncadd [#allocation3], 4294967280 }
  0x5c   :  { %2045 = dma.done.wait [#allocation6], 32  }
  0x5d   :  { %2046 = vsyncadd [#allocation6], 4294967264 }
  0x5e   :  { %2047 = dma.done.wait [#allocation9], 512  }
  0x5f   :  { %2048 = vsyncadd [#allocation9], 4294966784 }
  0x60   :  { %2049 = dma.done.wait [#allocation12], 512  }
  0x61   :  { %2050 = vsyncadd [#allocation12], 4294966784 }
  0x62   :  { %2051 = dma.done.wait [#allocation15], 256  }
  0x63   :  { %2052 = vsyncadd [#allocation15], 4294967040  ;;  %v2184_v0 = vld [vmem:[%s2401_s1] sm:$0xff]  ;;  %vm152_vm0 = vcmask 261120   ;;  %v2192_v2 = vld [vmem:[%s2401_s1 + $0x8] sm:$0xff]  ;;  %v2067_v14 = vmov 0.0  }
  0x64   :  { %v146_v1 = vld [vmem:[%s2400_s0] sm:$0xff]  ;;  %v178_v3 = vmul.f32 %v2184_v0, %v2184_v0  ;;  %v179_v5 = vmul.f32 %v2192_v2, %v2192_v2  ;;  %v147_v6 = vld [vmem:[%s2400_s0 + $0x8] sm:$0xff]  ;;  %1663 = vmatprep.subr.bf16.mxu0 %v2067_v14  ;;  %1671 = vmatprep.subr.bf16.mxu1 %v2067_v14  ;;  %v1803_v15 = vld [vmem:[#allocation10] sm:$0xff]   ;;  %vm2068_vm1 = vmmov 0   ;;  %s2069_s3 = smov 96   ;;  %vm359_vm2 = vcmask 64512  }
  0x65   :  { %v150_v4 = vmul.f32 %v146_v1, %v146_v1  ;;  %v151_v7 = vmul.f32 %v147_v6, %v147_v6  ;;  %v1801_v12 = vld [vmem:[#allocation10 + $0x8] sm:$0xff]   ;;  %v1802_v13 = vld [vmem:[#allocation8 + $0x8] sm:$0xff]   ;;  %v1804_v16 = vld [vmem:[#allocation8] sm:$0xff]   ;;  %1667 = vmatprep.mubr.msk.bf16.mxu0 %vm2068_vm1, %v2067_v14  ;;  %1675 = vmatprep.mubr.msk.bf16.mxu1 %vm2068_vm1, %v2067_v14  ;;  %s2070_s19 = smov 120   ;;  %vm447_vm3 = vcmask 130048   ;;  %s2072_s20 = smov 88  }
  0x66   :  { %v180_v8 = vsel %vm152_vm0, %v178_v3, 0.0  ;;  %v183_v10 = vsel %vm152_vm0, %v179_v5, 0.0  ;;  %1664 = vmatpush3.bf16.msra.mxu0 %v1801_v12  ;;  %1672 = vmatpush3.bf16.msra.mxu1 %v1802_v13  ;;  %v1568_v17 = vld [vmem:[%s2410_s10 + $0x10] sm:$0xff]  ;;  %v1569_v18 = vld [vmem:[%s2410_s10 + $0x18] sm:$0xff]  ;;  %v1561_v35 = vld [vmem:[#allocation5] ss:$0 sm:$0xff] }
  0x67   :  { %v153_v9 = vsel %vm152_vm0, %v150_v4, 0.0  ;;  %181 = vadd.xlane.f32.xlu1 %v180_v8  ;;  %v156_v11 = vsel %vm152_vm0, %v151_v7, 0.0  ;;  %1665 = vmatprep.subr.bf16.mxu0 %v2067_v14  ;;  %v1560_v39 = vld [vmem:[#allocation2] ss:$0 sm:$0xff]  ;;  %v325_v61 = vld [vmem:[%s2410_s10 + $0x8] sm:$0xff]  ;;  %s2073_s4 = smov 112  }
  0x68   :  { %154 = vadd.xlane.f32.xlu0 %v153_v9  ;;  %1673 = vmatprep.subr.bf16.mxu1 %v2067_v14  ;;  %v2258_v12 = vld [vmem:[#allocation14 + $0x8] sm:$0xff]  ;;  %vm755_vm4 = vcmask 1043456   ;;  %s2074_s21 = smov 72   ;;  %s2075_s5 = smov 104   ;;  %vm1490_vm5 = vcmask 523264  }
  0x6a   :  { %1666 = vmatpush3.bf16.msra.mxu0 %v1803_v15  ;;  %1674 = vmatpush3.bf16.msra.mxu1 %v1804_v16 }
  0x6b   :  { %184 = vadd.xlane.f32.xlu1 %v183_v10 }
  0x6c   :  { %157 = vadd.xlane.f32.xlu0 %v156_v11 }
  0x7c   :  { %333 = vrot.lane.b32.xlu1 %v1568_v17, %s2057_s30  ;;  %v2260_v17 = vld [vmem:[#allocation14] sm:$0xff] }
  0x82   :  { %335 = vrot.lane.b32.xlu0 %v1569_v18, %s2057_s30 }
  0xf0   :  { %v182_v19 = vpop.xlane.xlu1 %181 }
  0xf1   :  { %v155_v20 = vpop.xlane.xlu0 %154  ;;  %v186_v21 = vmul.f32 0.03125, %v182_v19 }
  0xf2   :  { %v160_v22 = vmul.f32 0.03125, %v155_v20 }
  0xf3   :  { %v189_v23 = vadd.f32 1e-06, %v186_v21 }
  0xf4   :  { %v163_v24 = vadd.f32 1e-06, %v160_v22  ;;  %v185_v25 = vpop.xlane.xlu1 %184 }
  0xf5   :  { %v158_v26 = vpop.xlane.xlu0 %157  ;;  %1811 = vrsqrt.f32 %v189_v23  ;;  %v187_v27 = vmul.f32 0.03125, %v185_v25 }
  0xf6   :  { %v161_v28 = vmul.f32 0.03125, %v158_v26  ;;  %1813 = vrsqrt.f32 %v163_v24 }
  0xf7   :  { %v190_v29 = vadd.f32 1e-06, %v187_v27 }
  0xf8   :  { %v164_v30 = vadd.f32 1e-06, %v161_v28  ;;  %v334_v59 = vpop.permute.xlu1 %333 }
  0xf9   :  { %1815 = vrsqrt.f32 %v190_v29  ;;  %v336_v53 = vpop.permute.xlu0 %335 }
  0xfa   :  { %1817 = vrsqrt.f32 %v164_v30 }
 0x102   :  { %v1812_v31 = vpop.eup %1811 }
 0x103   :  { %v1814_v32 = vpop.eup %1813  ;;  %v193_v33 = vmul.f32 %v1812_v31, %v2184_v0 }
 0x104   :  { %v167_v36 = vmul.f32 %v1814_v32, %v146_v1  ;;  %v324_v1 = vld [vmem:[%s2410_s10] sm:$0xff]  ;;  %s2071_s10 = smov 80  }
 0x105   :  { %v201_v41 = vmul.f32 %v1561_v35, %v193_v33 }
 0x106   :  { %v1816_v34 = vpop.eup %1815  ;;  %v175_v43 = vmul.f32 %v1560_v39, %v167_v36 }
 0x107   :  { %v1818_v37 = vpop.eup %1817  ;;  %v194_v38 = vmul.f32 %v1816_v34, %v2192_v2 }
 0x108   :  { %v168_v40 = vmul.f32 %v1818_v37, %v147_v6 }
 0x109   :  { %v202_v42 = vmul.f32 %v1561_v35, %v194_v38 }
 0x10a   :  { %v176_v44 = vmul.f32 %v1560_v39, %v168_v40 }
 0x10b   :  { %v203_v45 = vpack.c.bf16 %v202_v42, %v201_v41 }
 0x10c   :  { %v177_v46 = vpack.c.bf16 %v176_v44, %v175_v43 }
 0x10d   :  { %1668 = vmatmul.mubr.msk.bf16.vlgmr.msra.gmra.mxu0 %vm152_vm0, %v203_v45 }
 0x10e   :  { %1676 = vmatmul.mubr.msk.bf16.vlgmr.msra.gmra.mxu1 %vm152_vm0, %v177_v46 }
 0x1cd   :  { %v261_v47 = vpop.f32.mrf.mxu0 }
 0x1ce   :  { %v317_v48 = vpop.f32.mrf.mxu1 }
 0x1cf   :  { %v1669_v49 = vpop.f32.mrf.mxu0  ;;  %v318_v57 = vadd.f32 %v317_v48, %v261_v47 }
 0x1d0   :  { %v1677_v50 = vpop.f32.mrf.mxu1 }
 0x1d1   :  { %v264_v51 = vpop.f32.mrf.mxu0  ;;  %v339_v60 = vmul.f32 %v334_v59, %v318_v57  ;;  %v326_v4 = vmul.f32 %v324_v1, %v318_v57 }
 0x1d2   :  { %v320_v52 = vpop.f32.mrf.mxu1 }
 0x1d3   :  { %v321_v54 = vadd.f32 %v320_v52, %v264_v51  ;;  %v1670_v55 = vpop.f32.mrf.mxu0 }
 0x1d4   :  { %v1678_v56 = vpop.f32.mrf.mxu1 }
 0x1d5   :  { %v340_v58 = vmul.f32 %v336_v53, %v321_v54  ;;  %v327_v62 = vmul.f32 %v325_v61, %v321_v54 }
 0x1d7   :  { %345 = vrot.lane.b32.xlu1 %v340_v58, %s2057_s30 }
 0x1db   :  { %343 = vrot.lane.b32.xlu1 %v339_v60, %s2057_s30 }
 0x249   :  { %v346_v63 = vpop.permute.xlu1 %345 }
 0x24a   :  { %v2233_v3 = vadd.f32 %v346_v63, %v327_v62  ;;  %v751_v62 = vld [vmem:[#allocation11 + $0x4] sm:$0xf] }
 0x24c   :  { %357 = vrot.lane.b32.xlu0 %v2233_v3, %s2069_s3 }
 0x24d   :  { %v344_v5 = vpop.permute.xlu1 %343 }
 0x24e   :  { %v2236_v6 = vadd.f32 %v344_v5, %v326_v4  ;;  %v757_v4 = vsel %vm755_vm4, %v751_v62, 0 }
 0x250   :  { %559 = vrot.lane.b32.xlu0 %v2236_v6, %s2070_s19  ;;  %355 = vrot.lane.b32.xlu1 %v2236_v6, %s2069_s3 }
 0x251   :  { %1683 = vmatprep.mubr.msk.f32.mxu1 %vm359_vm2, %v2236_v6 }
 0x254   :  { %561 = vrot.lane.b32.xlu1 %v2233_v3, %s2070_s19 }
 0x2be   :  { %v358_v7 = vpop.permute.xlu0 %357 }
 0x2bf   :  { %1679 = vmatprep.subr.msk.mxu1 %vm359_vm2, %v358_v7  ;;  %1693 = vmatprep.subr.msk.mxu0 %vm359_vm2, %v358_v7 }
 0x2c0   :  { %1680 = vmatpush3.xpose.msk.msra.mxu1 %vm359_vm2, %v358_v7  ;;  %1694 = vmatpush3.xpose.msk.msra.mxu0 %vm359_vm2, %v358_v7  ;;  %v558_v7 = vld [vmem:[#allocation11] sm:$0xf] }
 0x2c2   :  { %v560_v8 = vpop.permute.xlu0 %559  ;;  %v356_v9 = vpop.permute.xlu1 %355 }
 0x2c3   :  { %1681 = vmatprep.subr.msk.mxu1 %vm359_vm2, %v356_v9  ;;  %1695 = vmatprep.subr.msk.mxu0 %vm359_vm2, %v356_v9 }
 0x2c4   :  { %1697 = vmatprep.mubr.msk.f32.mxu0 %vm359_vm2, %v560_v8  ;;  %1682 = vmatpush3.xpose.msk.msra.mxu1 %vm359_vm2, %v356_v9  ;;  %v804_v8 = vsel %vm755_vm4, %v558_v7, 0 }
 0x2c5   :  { %1696 = vmatpush3.xpose.msk.msra.mxu0 %vm359_vm2, %v356_v9 }
 0x2c6   :  { %v562_v10 = vpop.permute.xlu1 %561  ;;  %1713 = vmatprep.subr.bf16.mxu0 %v2067_v14 }
 0x2c7   :  { %1684 = vmatmul.mubr.msk.f32.vlgmr.msra.gmra.mxu1 %vm359_vm2, %v2233_v3 }
 0x2c8   :  { %1698 = vmatmul.mubr.msk.f32.vlgmr.msra.gmra.mxu0 %vm359_vm2, %v562_v10 }
 0x2c9   :  { %1715 = vmatprep.mubr.msk.bf16.mxu0 %vm2068_vm1, %v2067_v14  ;;  %1714 = vmatpush3.bf16.msra.mxu0 %v804_v8 }
 0x387   :  { %v1685_v11 = vpop.f32.mrf.mxu1 }
 0x388   :  { %v444_v13 = vmul.f32 0.35355338, %v1685_v11  ;;  %v1699_v15 = vpop.f32.mrf.mxu0 }
 0x389   :  { %v434_v16 = vpop.f32.mrf.mxu1  ;;  %v643_v24 = vmul.f32 0.35355338, %v1699_v15 }
 0x38a   :  { %v443_v18 = vmul.f32 0.35355338, %v434_v16  ;;  %v633_v19 = vpop.f32.mrf.mxu0  ;;  %v446_v20 = vadd.f32 %v444_v13, %v2258_v12 }
 0x38b   :  { %v642_v21 = vmul.f32 0.35355338, %v633_v19  ;;  %v645_v28 = vadd.f32 %v643_v24, %v2258_v12 }
 0x38c   :  { %v451_v22 = vsel %vm447_vm3, %v446_v20, -inf  ;;  %v445_v23 = vadd.f32 %v443_v18, %v2260_v17 }
 0x38d   :  { %452 = vmax.xlane.f32.xlu1 %v451_v22  ;;  %v644_v26 = vadd.f32 %v642_v21, %v2260_v17  ;;  %v649_v29 = vsel %vm447_vm3, %v645_v28, -inf }
 0x38e   :  { %v448_v25 = vsel %vm447_vm3, %v445_v23, -inf }
 0x38f   :  { %449 = vmax.xlane.f32.xlu0 %v448_v25  ;;  %v646_v27 = vsel %vm447_vm3, %v644_v26, -inf }
 0x393   :  { %647 = vmax.xlane.f32.xlu0 %v646_v27 }
 0x397   :  { %650 = vmax.xlane.f32.xlu0 %v649_v29 }
 0x416   :  { %v453_v30 = vpop.xlane.xlu1 %452 }
 0x417   :  { %v455_v31 = vsub.f32 %v446_v20, %v453_v30 }
 0x418   :  { %v450_v32 = vpop.xlane.xlu0 %449 }
 0x419   :  { %v458_v33 = vmul.f32 1.442695, %v455_v31  ;;  %v454_v34 = vsub.f32 %v445_v23, %v450_v32 }
 0x41b   :  { %1819 = vpow2.f32 %v458_v33  ;;  %v456_v35 = vmul.f32 1.442695, %v454_v34 }
 0x41c   :  { %v648_v36 = vpop.xlane.xlu0 %647 }
 0x41d   :  { %1821 = vpow2.f32 %v456_v35  ;;  %v652_v37 = vsub.f32 %v644_v26, %v648_v36 }
 0x41f   :  { %v654_v38 = vmul.f32 1.442695, %v652_v37 }
 0x420   :  { %v651_v39 = vpop.xlane.xlu0 %650 }
 0x421   :  { %1823 = vpow2.f32 %v654_v38  ;;  %v653_v40 = vsub.f32 %v645_v28, %v651_v39 }
 0x423   :  { %v656_v41 = vmul.f32 1.442695, %v653_v40 }
 0x425   :  { %1825 = vpow2.f32 %v656_v41 }
 0x428   :  { %v1820_v42 = vpop.eup %1819 }
 0x429   :  { %v463_v43 = vsel %vm447_vm3, %v1820_v42, 0.0 }
 0x42a   :  { %v1822_v44 = vpop.eup %1821  ;;  %464 = vadd.xlane.f32.xlu1 %v463_v43 }
 0x42b   :  { %v460_v45 = vsel %vm447_vm3, %v1822_v44, 0.0 }
 0x42c   :  { %461 = vadd.xlane.f32.xlu0 %v460_v45 }
 0x42e   :  { %v1824_v46 = vpop.eup %1823 }
 0x42f   :  { %v658_v47 = vsel %vm447_vm3, %v1824_v46, 0.0 }
 0x430   :  { %659 = vadd.xlane.f32.xlu0 %v658_v47 }
 0x432   :  { %v1826_v48 = vpop.eup %1825 }
 0x433   :  { %v661_v49 = vsel %vm447_vm3, %v1826_v48, 0.0 }
 0x434   :  { %662 = vadd.xlane.f32.xlu1 %v661_v49  ;;  %v1053_v49 = vld [vmem:[#allocation11 + $0x8] sm:$0xf] }
 0x445   :  { %470 = vrot.lane.b32.xlu1 %v2236_v6, %s2071_s10 }
 0x446   :  { %472 = vrot.lane.b32.xlu0 %v2233_v3, %s2071_s10 }
 0x449   :  { %853 = vrot.lane.b32.xlu1 %v2233_v3, %s2072_s20 }
 0x44a   :  { %847 = vrot.lane.b32.xlu0 %v2236_v6, %s2073_s4 }
 0x44d   :  { %851 = vrot.lane.b32.xlu1 %v2236_v6, %s2072_s20 }
 0x451   :  { %849 = vrot.lane.b32.xlu1 %v2233_v3, %s2073_s4 }
 0x4b3   :  { %v465_v50 = vpop.xlane.xlu1 %464 }
 0x4b4   :  { %1827 = vrcp.f32 %v465_v50 }
 0x4b5   :  { %v462_v51 = vpop.xlane.xlu0 %461 }
 0x4b6   :  { %1829 = vrcp.f32 %v462_v51 }
 0x4b9   :  { %v660_v52 = vpop.xlane.xlu0 %659 }
 0x4ba   :  { %1831 = vrcp.f32 %v660_v52 }
 0x4bd   :  { %v663_v53 = vpop.xlane.xlu1 %662  ;;  %v473_v54 = vpop.permute.xlu0 %472 }
 0x4be   :  { %1833 = vrcp.f32 %v663_v53  ;;  %1686 = vmatprep.subr.mxu1 %v473_v54 }
 0x4bf   :  { %1687 = vmatpush3.msra.mxu1 %v473_v54 }
 0x4c1   :  { %v471_v55 = vpop.permute.xlu1 %470  ;;  %v1828_v56 = vpop.eup %1827 }
 0x4c2   :  { %1688 = vmatprep.subr.mxu1 %v471_v55  ;;  %v469_v59 = vmul.f32 %v1828_v56, %v1820_v42  ;;  %v848_v18 = vpop.permute.xlu0 %847 }
 0x4c3   :  { %v1830_v57 = vpop.eup %1829  ;;  %1689 = vmatpush3.msra.mxu1 %v471_v55 }
 0x4c4   :  { %1700 = vmatprep.subr.mxu1 %v473_v54  ;;  %v468_v58 = vmul.f32 %v1830_v57, %v1822_v44 }
 0x4c5   :  { %v2286_v5 = vpop.permute.xlu1 %853 }
 0x4c6   :  { %1690 = vmatprep.mubr.msk.f32.mxu1 %vm447_vm3, %v468_v58 }
 0x4c7   :  { %v1832_v60 = vpop.eup %1831  ;;  %1691 = vmatmul.mubr.msk.f32.vlgmr.msra.gmra.mxu1 %vm447_vm3, %v469_v59 }
 0x4c8   :  { %1701 = vmatpush3.msra.mxu1 %v473_v54  ;;  %v666_v61 = vmul.f32 %v1832_v60, %v1824_v46 }
 0x4c9   :  { %1702 = vmatprep.subr.mxu1 %v471_v55  ;;  %v2295_v19 = vpop.permute.xlu1 %851 }
 0x4ca   :  { %1703 = vmatpush3.msra.mxu1 %v471_v55  ;;  %1704 = vmatprep.mubr.msk.f32.mxu1 %vm447_vm3, %v666_v61 }
 0x4cb   :  { %v1834_v63 = vpop.eup %1833  ;;  %1707 = vmatprep.subr.bf16.mxu1 %v2067_v14 }
 0x4cc   :  { %v667_v1 = vmul.f32 %v1834_v63, %v1826_v48 }
 0x4cd   :  { %v850_v20 = vpop.permute.xlu1 %849 }
 0x4ce   :  { %1705 = vmatmul.mubr.msk.f32.vlgmr.msra.gmra.mxu1 %vm447_vm3, %v667_v1 }
 0x4cf   :  { %1708 = vmatpush3.bf16.msra.mxu1 %v757_v4  ;;  %1709 = vmatprep.mubr.msk.bf16.mxu1 %vm2068_vm1, %v2067_v14 }
 0x4d0   :  { %1719 = vmatprep.subr.msk.mxu1 %vm359_vm2, %v2286_v5 }
 0x587   :  { %v1692_v9 = vpop.f32.mrf.mxu1 }
 0x589   :  { %v548_v10 = vpop.f32.mrf.mxu1 }
 0x58a   :  { %v557_v11 = vpack.c.bf16 %v1692_v9, %v548_v10 }
 0x58c   :  { %1716 = vmatmul.mubr.msk.bf16.vlgmr.msra.gmra.mxu0 %vm359_vm2, %v557_v11 }
 0x58e   :  { %v1706_v13 = vpop.f32.mrf.mxu1 }
 0x590   :  { %v740_v15 = vpop.f32.mrf.mxu1 }
 0x591   :  { %v749_v16 = vpack.c.bf16 %v1706_v13, %v740_v15 }
 0x593   :  { %1710 = vmatmul.mubr.msk.bf16.vlgmr.msra.gmra.mxu1 %vm359_vm2, %v749_v16 }
 0x594   :  { %1720 = vmatpush3.xpose.msk.msra.mxu1 %vm359_vm2, %v2286_v5  ;;  %1723 = vmatprep.mubr.msk.f32.mxu1 %vm359_vm2, %v848_v18 }
 0x595   :  { %1721 = vmatprep.subr.msk.mxu1 %vm359_vm2, %v2295_v19 }
 0x598   :  { %1722 = vmatpush3.xpose.msk.msra.mxu1 %vm359_vm2, %v2295_v19 }
 0x599   :  { %1733 = vmatprep.subr.bf16.mxu1 %v2067_v14 }
 0x59b   :  { %1724 = vmatmul.mubr.msk.f32.vlgmr.msra.gmra.mxu1 %vm359_vm2, %v850_v20 }
 0x59c   :  { %1735 = vmatprep.mubr.msk.bf16.mxu1 %vm2068_vm1, %v2067_v14 }
 0x64c   :  { %v840_v21 = vpop.f32.mrf.mxu0 }
 0x64e   :  { %v1717_v22 = vpop.f32.mrf.mxu0 }
 0x650   :  { %v843_v23 = vpop.f32.mrf.mxu0 }
 0x652   :  { %v1718_v24 = vpop.f32.mrf.mxu0 }
 0x653   :  { %v793_v25 = vpop.f32.mrf.mxu1 }
 0x654   :  { %v2308_v26 = vadd.f32 %v840_v21, %v793_v25 }
 0x655   :  { %v1711_v27 = vpop.f32.mrf.mxu1 }
 0x657   :  { %v796_v28 = vpop.f32.mrf.mxu1 }
 0x658   :  { %v2310_v29 = vadd.f32 %v843_v23, %v796_v28 }
 0x659   :  { %v1712_v30 = vpop.f32.mrf.mxu1 }
 0x65b   :  { %v1725_v31 = vpop.f32.mrf.mxu1 }
 0x65c   :  { %v939_v32 = vmul.f32 0.35355338, %v1725_v31 }
 0x65d   :  { %v929_v33 = vpop.f32.mrf.mxu1 }
 0x65e   :  { %v938_v34 = vmul.f32 0.35355338, %v929_v33  ;;  %v941_v35 = vadd.f32 %v939_v32, %v2258_v12 }
 0x660   :  { %v945_v36 = vsel %vm447_vm3, %v941_v35, -inf  ;;  %v940_v37 = vadd.f32 %v938_v34, %v2260_v17 }
 0x661   :  { %946 = vmax.xlane.f32.xlu1 %v945_v36 }
 0x662   :  { %v942_v38 = vsel %vm447_vm3, %v940_v37, -inf }
 0x663   :  { %943 = vmax.xlane.f32.xlu0 %v942_v38 }
 0x672   :  { %964 = vrot.lane.b32.xlu1 %v2236_v6, %s2074_s21 }
 0x676   :  { %1103 = vrot.lane.b32.xlu1 %v2236_v6, %s2075_s5  ;;  %v1058_v6 = vsel %vm755_vm4, %v1053_v49, 0 }
 0x677   :  { %1734 = vmatpush3.bf16.msra.mxu1 %v1058_v6  ;;  %v1806_v6 = vld [vmem:[#allocation13] sm:$0xff]  }
 0x67a   :  { %1105 = vrot.lane.b32.xlu1 %v2233_v3, %s2075_s5 }
 0x6ea   :  { %v947_v39 = vpop.xlane.xlu1 %946 }
 0x6eb   :  { %v949_v40 = vsub.f32 %v941_v35, %v947_v39 }
 0x6ec   :  { %v944_v41 = vpop.xlane.xlu0 %943 }
 0x6ed   :  { %v952_v42 = vmul.f32 1.442695, %v949_v40  ;;  %v948_v43 = vsub.f32 %v940_v37, %v944_v41 }
 0x6ee   :  { %v965_v53 = vpop.permute.xlu1 %964 }
 0x6ef   :  { %1835 = vpow2.f32 %v952_v42  ;;  %v950_v44 = vmul.f32 1.442695, %v948_v43 }
 0x6f1   :  { %1837 = vpow2.f32 %v950_v44 }
 0x6fc   :  { %v1836_v45 = vpop.eup %1835 }
 0x6fd   :  { %v957_v46 = vsel %vm447_vm3, %v1836_v45, 0.0 }
 0x6fe   :  { %v1838_v47 = vpop.eup %1837  ;;  %958 = vadd.xlane.f32.xlu0 %v957_v46 }
 0x6ff   :  { %v954_v48 = vsel %vm447_vm3, %v1838_v47, 0.0 }
 0x702   :  { %955 = vadd.xlane.f32.xlu0 %v954_v48 }
 0x718   :  { %966 = vrot.lane.b32.xlu0 %v2233_v3, %s2074_s21  ;;  %v1104_v3 = vpop.permute.xlu1 %1103 }
 0x71c   :  { %v1106_v58 = vpop.permute.xlu1 %1105 }
 0x787   :  { %v959_v50 = vpop.xlane.xlu0 %958 }
 0x788   :  { %1839 = vrcp.f32 %v959_v50 }
 0x78b   :  { %v956_v51 = vpop.xlane.xlu0 %955 }
 0x78c   :  { %1841 = vrcp.f32 %v956_v51 }
 0x78f   :  { %v967_v52 = vpop.permute.xlu0 %966 }
 0x790   :  { %1726 = vmatprep.subr.mxu0 %v967_v52  ;;  %1746 = vmatprep.subr.mxu1 %v967_v52 }
 0x791   :  { %1727 = vmatpush3.msra.mxu0 %v967_v52 }
 0x792   :  { %1728 = vmatprep.subr.mxu0 %v965_v53 }
 0x793   :  { %1729 = vmatpush3.msra.mxu0 %v965_v53 }
 0x794   :  { %1739 = vmatprep.subr.msk.mxu0 %vm359_vm2, %v2286_v5 }
 0x795   :  { %v1840_v54 = vpop.eup %1839 }
 0x796   :  { %v963_v57 = vmul.f32 %v1840_v54, %v1836_v45 }
 0x799   :  { %v1842_v55 = vpop.eup %1841 }
 0x79a   :  { %v962_v56 = vmul.f32 %v1842_v55, %v1838_v47 }
 0x79c   :  { %1730 = vmatprep.mubr.msk.f32.mxu0 %vm447_vm3, %v962_v56 }
 0x79d   :  { %1731 = vmatmul.mubr.msk.f32.vlgmr.msra.gmra.mxu0 %vm447_vm3, %v963_v57 }
 0x79e   :  { %1740 = vmatpush3.xpose.msk.msra.mxu0 %vm359_vm2, %v2286_v5  ;;  %1743 = vmatprep.mubr.msk.f32.mxu0 %vm359_vm2, %v1104_v3  ;;  %v1598_v3 = vld [vmem:[#allocation7] ss:$0 sm:$0xff] }
 0x79f   :  { %1741 = vmatprep.subr.msk.mxu0 %vm359_vm2, %v2295_v19 }
 0x7a2   :  { %1742 = vmatpush3.xpose.msk.msra.mxu0 %vm359_vm2, %v2295_v19 }
 0x7a3   :  { %1753 = vmatprep.subr.bf16.mxu0 %v2067_v14 }
 0x7a5   :  { %1744 = vmatmul.mubr.msk.f32.vlgmr.msra.gmra.mxu0 %vm359_vm2, %v1106_v58 }
 0x7a6   :  { %1755 = vmatprep.mubr.msk.bf16.mxu0 %vm2068_vm1, %v2067_v14 }
 0x85d   :  { %v1732_v59 = vpop.f32.mrf.mxu0 }
 0x85f   :  { %v1042_v60 = vpop.f32.mrf.mxu0 }
 0x860   :  { %v1051_v61 = vpack.c.bf16 %v1732_v59, %v1042_v60 }
 0x862   :  { %1736 = vmatmul.mubr.msk.bf16.vlgmr.msra.gmra.mxu1 %vm359_vm2, %v1051_v61 }
 0x863   :  { %1747 = vmatpush3.msra.mxu1 %v967_v52 }
 0x864   :  { %1748 = vmatprep.subr.mxu1 %v965_v53 }
 0x865   :  { %v1745_v62 = vpop.f32.mrf.mxu0  ;;  %1749 = vmatpush3.msra.mxu1 %v965_v53 }
 0x866   :  { %v1187_v63 = vmul.f32 0.35355338, %v1745_v62  ;;  %1759 = vmatprep.subr.bf16.mxu1 %v2067_v14  ;;  %v1807_v62 = vld [vmem:[%s2409_s9 + $0x18] sm:$0xff]  }
 0x867   :  { %v1177_v1 = vpop.f32.mrf.mxu0 }
 0x868   :  { %v1186_v4 = vmul.f32 0.35355338, %v1177_v1  ;;  %v1189_v5 = vadd.f32 %v1187_v63, %v2258_v12  ;;  %v1808_v63 = vld [vmem:[%s2409_s9 + $0x10] sm:$0xff]   ;;  %v1809_v1 = vld [vmem:[%s2409_s9 + $0x8] sm:$0xff]  }
 0x86a   :  { %v1193_v7 = vsel %vm447_vm3, %v1189_v5, -inf  ;;  %v1188_v8 = vadd.f32 %v1186_v4, %v2260_v17  ;;  %v1810_v4 = vld [vmem:[%s2409_s9] sm:$0xff]   ;;  %s2076_s9 = smov [#allocation16]  }
 0x86b   :  { %1194 = vmax.xlane.f32.xlu1 %v1193_v7 }
 0x86c   :  { %v1190_v9 = vsel %vm447_vm3, %v1188_v8, -inf }
 0x86d   :  { %1191 = vmax.xlane.f32.xlu0 %v1190_v9 }
 0x8f4   :  { %v1195_v10 = vpop.xlane.xlu1 %1194 }
 0x8f5   :  { %v1197_v11 = vsub.f32 %v1189_v5, %v1195_v10 }
 0x8f6   :  { %v1192_v13 = vpop.xlane.xlu0 %1191 }
 0x8f7   :  { %v1196_v15 = vsub.f32 %v1188_v8, %v1192_v13  ;;  %v1200_v16 = vmul.f32 1.442695, %v1197_v11 }
 0x8f9   :  { %v1198_v18 = vmul.f32 1.442695, %v1196_v15 }
 0x8fb   :  { %1843 = vpow2.f32 %v1198_v18 }
 0x8fc   :  { %1845 = vpow2.f32 %v1200_v16 }
 0x908   :  { %v1844_v19 = vpop.eup %1843 }
 0x909   :  { %v1202_v20 = vsel %vm447_vm3, %v1844_v19, 0.0  ;;  %v1846_v12 = vpop.eup %1845 }
 0x90a   :  { %1203 = vadd.xlane.f32.xlu0 %v1202_v20  ;;  %v1205_v21 = vsel %vm447_vm3, %v1846_v12, 0.0 }
 0x90e   :  { %1206 = vadd.xlane.f32.xlu0 %v1205_v21 }
 0x922   :  { %v1094_v17 = vpop.f32.mrf.mxu1 }
 0x923   :  { %v1101_v22 = vadd.f32 %v1094_v17, %v2308_v26  ;;  %v1295_v26 = vld [vmem:[#allocation11 + $0xc] sm:$0xf] }
 0x924   :  { %v1737_v23 = vpop.f32.mrf.mxu1  ;;  %v1300_v35 = vsel %vm755_vm4, %v1295_v26, 0 }
 0x925   :  { %1754 = vmatpush3.bf16.msra.mxu0 %v1300_v35 }
 0x926   :  { %v1097_v24 = vpop.f32.mrf.mxu1  ;;  %1767 = vmatprep.subr.bf16.mxu0 %v2067_v14 }
 0x927   :  { %v1102_v25 = vadd.f32 %v1097_v24, %v2310_v29 }
 0x928   :  { %v1738_v27 = vpop.f32.mrf.mxu1 }
 0x993   :  { %v1204_v28 = vpop.xlane.xlu0 %1203 }
 0x994   :  { %1847 = vrcp.f32 %v1204_v28 }
 0x997   :  { %v1207_v30 = vpop.xlane.xlu0 %1206 }
 0x998   :  { %1849 = vrcp.f32 %v1207_v30 }
 0x9a1   :  { %v1848_v31 = vpop.eup %1847 }
 0x9a2   :  { %v1210_v32 = vmul.f32 %v1848_v31, %v1844_v19 }
 0x9a4   :  { %1750 = vmatprep.mubr.msk.f32.mxu1 %vm447_vm3, %v1210_v32 }
 0x9a5   :  { %v1850_v33 = vpop.eup %1849 }
 0x9a6   :  { %v1211_v34 = vmul.f32 %v1850_v33, %v1846_v12 }
 0x9a8   :  { %1751 = vmatmul.mubr.msk.f32.vlgmr.msra.gmra.mxu1 %vm447_vm3, %v1211_v34 }
 0x9a9   :  { %1763 = vmatprep.mubr.msk.bf16.mxu1 %vm2068_vm1, %v2067_v14 }
 0xa68   :  { %v1752_v29 = vpop.f32.mrf.mxu1 }
 0xa6a   :  { %v1284_v36 = vpop.f32.mrf.mxu1 }
 0xa6b   :  { %v1293_v37 = vpack.c.bf16 %v1752_v29, %v1284_v36 }
 0xa6d   :  { %1756 = vmatmul.mubr.msk.bf16.vlgmr.msra.gmra.mxu0 %vm359_vm2, %v1293_v37 }
 0xa6e   :  { %1775 = vmatprep.mubr.msk.bf16.mxu0 %vm2068_vm1, %v2067_v14  ;;  %1768 = vmatpush3.bf16.msra.mxu0 %v1807_v62 }
 0xa6f   :  { %1769 = vmatprep.subr.bf16.mxu0 %v2067_v14 }
 0xa72   :  { %1770 = vmatpush3.bf16.msra.mxu0 %v1808_v63 }
 0xa73   :  { %1771 = vmatprep.subr.bf16.mxu0 %v2067_v14 }
 0xa76   :  { %1772 = vmatpush3.bf16.msra.mxu0 %v1809_v1 }
 0xa77   :  { %1773 = vmatprep.subr.bf16.mxu0 %v2067_v14 }
 0xa7a   :  { %1774 = vmatpush3.bf16.msra.mxu0 %v1810_v4 }
 0xb2d   :  { %v1336_v38 = vpop.f32.mrf.mxu0 }
 0xb2e   :  { %v1343_v39 = vadd.f32 %v1336_v38, %v1101_v22 }
 0xb2f   :  { %v1757_v40 = vpop.f32.mrf.mxu0 }
 0xb30   :  { %v2358_v41 = vadd.f32 %v1343_v39, %v2184_v0  ;;  %v1805_v0 = vld [vmem:[#allocation13 + $0x8] sm:$0xff]  }
 0xb31   :  { %v1339_v42 = vpop.f32.mrf.mxu0  ;;  %1760 = vmatpush3.bf16.msra.mxu1 %v1805_v0 }
 0xb32   :  { %v1344_v43 = vadd.f32 %v1339_v42, %v1102_v25  ;;  %v1347_v44 = vmul.f32 %v2358_v41, %v2358_v41  ;;  %1761 = vmatprep.subr.bf16.mxu1 %v2067_v14 }
 0xb33   :  { %v1758_v45 = vpop.f32.mrf.mxu0 }
 0xb34   :  { %v2363_v46 = vadd.f32 %v1344_v43, %v2192_v2  ;;  %v1349_v47 = vsel %vm152_vm0, %v1347_v44, 0.0 }
 0xb35   :  { %1350 = vadd.xlane.f32.xlu0 %v1349_v47  ;;  %1762 = vmatpush3.bf16.msra.mxu1 %v1806_v6 }
 0xb36   :  { %v1348_v48 = vmul.f32 %v2363_v46, %v2363_v46 }
 0xb38   :  { %v1352_v49 = vsel %vm152_vm0, %v1348_v48, 0.0 }
 0xb39   :  { %1353 = vadd.xlane.f32.xlu1 %v1352_v49 }
 0xbbe   :  { %v1351_v50 = vpop.xlane.xlu0 %1350 }
 0xbbf   :  { %v1355_v51 = vmul.f32 0.03125, %v1351_v50 }
 0xbc1   :  { %v1358_v52 = vadd.f32 1e-06, %v1355_v51 }
 0xbc2   :  { %v1354_v2 = vpop.xlane.xlu1 %1353 }
 0xbc3   :  { %1851 = vrsqrt.f32 %v1358_v52  ;;  %v1356_v53 = vmul.f32 0.03125, %v1354_v2 }
 0xbc5   :  { %v1359_v54 = vadd.f32 1e-06, %v1356_v53 }
 0xbc7   :  { %1853 = vrsqrt.f32 %v1359_v54 }
 0xbd0   :  { %v1852_v55 = vpop.eup %1851 }
 0xbd1   :  { %v1362_v56 = vmul.f32 %v1852_v55, %v2358_v41 }
 0xbd3   :  { %v1370_v59 = vmul.f32 %v1598_v3, %v1362_v56 }
 0xbd4   :  { %v1854_v57 = vpop.eup %1853 }
 0xbd5   :  { %v1363_v58 = vmul.f32 %v1854_v57, %v2363_v46 }
 0xbd7   :  { %v1371_v60 = vmul.f32 %v1598_v3, %v1363_v58 }
 0xbd9   :  { %v1372_v61 = vpack.c.bf16 %v1371_v60, %v1370_v59 }
 0xbdb   :  { %1764 = vmatmul.mubr.msk.bf16.vlgmr.msra.gmra.mxu1 %vm152_vm0, %v1372_v61 }
 0xc9b   :  { %v1426_v5 = vpop.f32.mrf.mxu1 }
 0xc9c   :  { %1449 = vrot.lane.b32.xlu0 %v1426_v5, %s2057_s30  ;;  %v1602_v10 = vmul.f32 -1.442695, %v1426_v5 }
 0xc9d   :  { %v1765_v7 = vpop.f32.mrf.mxu1 }
 0xc9e   :  { %1855 = vpow2.f32 %v1602_v10 }
 0xc9f   :  { %v1429_v8 = vpop.f32.mrf.mxu1 }
 0xca0   :  { %1451 = vrot.lane.b32.xlu1 %v1429_v8, %s2057_s30  ;;  %v1603_v11 = vmul.f32 -1.442695, %v1429_v8  ;;  %s1544_s30 = sshll.u32 %s2076_s9, 4  ;;  %s1545_s30 = int_to_ptr.vmem [resolvable:$true] %s1544_s30 }
 0xca1   :  { %v1766_v9 = vpop.f32.mrf.mxu1  ;;  %s2023_s28 = scalar_lea.vmem %s1545_s30, 256  ;;  %p2028_p13 = scmp.lt.s32.totalorder %s1545_s30, %s1545_s30 }
 0xca2   :  { %1857 = vpow2.f32 %v1603_v11  ;;  %p2024_p12 = scmp.ne.s32.totalorder %s1545_s30, %s2023_s28  ;;  %p2029_p0 = scmp.lt.s32.totalorder %s2023_s28, %s2023_s28 }
 0xca4   :  { %p2030_p1 = por %p2029_p0, %p2028_p13 }
 0xca6   :  { %p2031_p2 = pnand %p2030_p1, %p2024_p12 }
 0xcab   :  { %v1856_v13 = vpop.eup %1855 }
 0xcac   :  { %v1439_v14 = vadd.f32 1.0, %v1856_v13 }
 0xcae   :  { %1859 = vrcp.f32 %v1439_v14 }
 0xcaf   :  { %v1858_v15 = vpop.eup %1857 }
 0xcb0   :  { %v1440_v16 = vadd.f32 1.0, %v1858_v15 }
 0xcb2   :  { %1861 = vrcp.f32 %v1440_v16 }
 0xcbb   :  { %v1860_v18 = vpop.eup %1859 }
 0xcbc   :  { %v1445_v12 = vmul.f32 %v1860_v18, %v1426_v5 }
 0xcbf   :  { %v1862_v19 = vpop.eup %1861 }
 0xcc0   :  { %v1446_v21 = vmul.f32 %v1862_v19, %v1429_v8 }
 0xd0e   :  { %v1450_v20 = vpop.permute.xlu0 %1449 }
 0xd0f   :  { %v1455_v22 = vmul.f32 %v1450_v20, %v1445_v12 }
 0xd12   :  { %v1452_v17 = vpop.permute.xlu1 %1451 }
 0xd13   :  { %v1456_v23 = vmul.f32 %v1452_v17, %v1446_v21 }
 0xd15   :  { %v1457_v24 = vpack.c.bf16 %v1456_v23, %v1455_v22 }
 0xd17   :  { %1776 = vmatmul.mubr.msk.bf16.vlgmr.msra.gmra.mxu0 %vm1490_vm5, %v1457_v24 }
 0xdd7   :  { %v1528_v25 = vpop.f32.mrf.mxu0 }
 0xdd8   :  { %v1535_v27 = vadd.f32 %v1528_v25, %v2358_v41 }
 0xdd9   :  { %v1777_v28 = vpop.f32.mrf.mxu0 }
 0xdda   :  { %1537 = vst.msk [vmem:[#allocation16] sm:$0xff] %vm152_vm0, %v1535_v27 }
 0xddb   :  { %v1531_v30 = vpop.f32.mrf.mxu0 }
 0xddc   :  { %v1536_v31 = vadd.f32 %v1531_v30, %v2363_v46 }
 0xddd   :  { %v1778_v32 = vpop.f32.mrf.mxu0 }
 0xdde   :  { %1538 = vst.msk [vmem:[#allocation16 + $0x8] sm:$0xff] %vm152_vm0, %v1536_v31 }
 0xddf   :  { %2034 = shalt.err (!%p2031_p2)
}
 0xde0   :  { %1550 = dma.vmem_to_hbm [thread:$0]  %s1545_s30, 256, %s2412_s12, [#allocation4], %s2065_s22, %s2065_s22, %s2066_s23  }
 0xde1   :  { %2053 = dma.done.wait [#allocation4], 256  }
 0xde2   :  { %2054 = vsyncadd [#allocation4], 4294967040 }
 0xde3   :  { %1554 = vsyncpa [#allocation3], 1 }
 0xde4   :  { %1555 = vsyncpa [#allocation6], 1 }
 0xde5   :  { %1556 = vsyncpa [#allocation9], 1 }
 0xde6   :  { %1557 = vsyncpa [#allocation12], 1 }
 0xde7   :  { %1558 = vsyncpa [#allocation15], 1 }
 0xde8   :  { %1559 = vsyncpa [#allocation4], 1 }

</bundles_post_ra>
